<compile_context>
chip_gen: v5e
topology: v5e:2x2
jax: 0.10.0
libtpu: 0.0.40
codegen_flags: <defaults>
</compile_context>

<pallas_src>
import functools

import jax
import jax.numpy as jnp
from jax.experimental import pallas as pl
from jax.experimental.pallas import tpu as pltpu

HIDDEN = 512  # fixed by nn.Linear(512, num_classes)


def _fused_matmul_kernel(x_ref, w_ref, b_ref, out_ref):
    # x block: (TB, S*D_in) bf16, w: (S*D_in, CPAD) bf16 (mean already folded in),
    # b: (1, CPAD) f32.  One MXU matmul + bias.
    out_ref[...] = (
        jnp.dot(x_ref[...], w_ref[...], preferred_element_type=jnp.float32)
        + b_ref[...]
    ).astype(out_ref.dtype)


def _pool_matmul_kernel(x_ref, w_ref, b_ref, out_ref, *, inv_s):
    # x block: (TB, S, D_in) bf16.  Accumulate the S-mean in f32, then one fused matmul.
    pooled = jnp.sum(x_ref[...].astype(jnp.float32), axis=1) * inv_s   # (TB, D_in) f32
    out_ref[...] = (
        jnp.dot(pooled.astype(jnp.bfloat16), w_ref[...],
                preferred_element_type=jnp.float32)
        + b_ref[...]
    ).astype(out_ref.dtype)


def _pick_batch_tile(b8, bytes_per_row):
    """Largest multiple of 8 dividing b8, within a VMEM budget, grid>=2 if b8>=256."""
    vmem_x_budget = 40 * 1024 * 1024           # double-buffered x stream budget
    tb_vmem_cap = max(8, (vmem_x_budget // (2 * bytes_per_row)) // 8 * 8)
    cap = min(256, b8, tb_vmem_cap)
    if b8 >= 256:                              # keep >= 2 grid steps for v7x's 2 TCs
        cap = min(cap, max(128, (b8 // 2) // 8 * 8))
    cap = max(8, (cap // 8) * 8)
    for t in range(cap, 7, -8):
        if b8 % t == 0:
            return t
    return 8


def finetune_forward(x, w_enc, b_enc, w_cls, b_cls):
    """x: (B, S, D_in) float32; w_enc: (D_in, 512); b_enc: (1, 512);
    w_cls: (512, C); b_cls: (1, C).  Returns logits (B, C) float32."""
    B, S, D_in = x.shape
    C = w_cls.shape[1]
    CPAD = ((C + 127) // 128) * 128
    K = S * D_in

    # Collapse the affine chain in f32 (exact while the encoder is affine).
    w_fused = jnp.dot(w_enc, w_cls)                       # (D_in, C)
    b_fused = jnp.dot(b_enc, w_cls) + b_cls               # (1, C)
    w_fused = jnp.pad(w_fused, ((0, 0), (0, CPAD - C)))   # (D_in, CPAD)
    b_fused = jnp.pad(b_fused, ((0, 0), (0, CPAD - C)))   # (1, CPAD) f32

    B8 = ((B + 7) // 8) * 8                    # pad batch only up to a multiple of 8
    TB = _pick_batch_tile(B8, K * 2)           # x is streamed as bf16
    grid = (B8 // TB,)

    x_bf = x.astype(jnp.bfloat16)

    # Single-matmul path (mean folded into weight) when the tiled weight stays small.
    single_matmul = (S * D_in * CPAD * 2) <= (4 << 20)

    if single_matmul:
        x_in = x_bf.reshape(B, K)
        if B8 != B:
            x_in = jnp.pad(x_in, ((0, B8 - B), (0, 0)))
        w_in = (jnp.tile(w_fused, (S, 1)) * (1.0 / S)).astype(jnp.bfloat16)  # (K, CPAD)
        kernel = _fused_matmul_kernel
        in_specs = [
            pl.BlockSpec((TB, K), lambda b: (b, 0)),
            pl.BlockSpec((K, CPAD), lambda b: (0, 0)),
            pl.BlockSpec((1, CPAD), lambda b: (0, 0)),
        ]
        flops = 2 * B8 * K * CPAD
    else:
        x_in = x_bf
        if B8 != B:
            x_in = jnp.pad(x_in, ((0, B8 - B), (0, 0), (0, 0)))
        w_in = w_fused.astype(jnp.bfloat16)                                  # (D_in, CPAD)
        kernel = functools.partial(_pool_matmul_kernel, inv_s=1.0 / S)
        in_specs = [
            pl.BlockSpec((TB, S, D_in), lambda b: (b, 0, 0)),
            pl.BlockSpec((D_in, CPAD), lambda b: (0, 0)),
            pl.BlockSpec((1, CPAD), lambda b: (0, 0)),
        ]
        flops = 2 * B8 * D_in * CPAD + B8 * K

    # VMEM accounting: double-buffered x + out blocks, weight + bias resident.
    x_block_bytes = TB * K * 2
    out_block_bytes = TB * CPAD * 4
    w_bytes = int(w_in.size) * 2
    vmem_need = 2 * x_block_bytes + 2 * out_block_bytes + 2 * (w_bytes + CPAD * 4)
    vmem_limit = int(min(48 << 20, max(16 << 20, 2 * vmem_need)))

    cost = pl.CostEstimate(
        flops=int(flops),
        transcendentals=0,
        bytes_accessed=int(B8 * K * 2 + w_bytes + CPAD * 4 + B8 * CPAD * 4),
    )

    grid_spec = pltpu.PrefetchScalarGridSpec(
        num_scalar_prefetch=0,
        grid=grid,
        in_specs=in_specs,
        out_specs=pl.BlockSpec((TB, CPAD), lambda b: (b, 0)),
    )

    out = pl.pallas_call(
        kernel,
        out_shape=jax.ShapeDtypeStruct((B8, CPAD), jnp.float32),
        grid_spec=grid_spec,
        compiler_params=pltpu.CompilerParams(
            dimension_semantics=("parallel",),
            vmem_limit_bytes=vmem_limit,
        ),
        cost_estimate=cost,
    )(x_in, w_in, b_fused)

    return out[:B, :C]


def _reference(x, w_enc, b_enc, w_cls, b_cls):
    feats = jnp.einsum("bsd,dh->bsh", x, w_enc) + b_enc          # (B, S, 512)
    pooled = jnp.mean(feats, axis=1)                             # (B, 512)
    return pooled @ w_cls + b_cls[0]                             # (B, C)


if __name__ == "__main__":
    B, S, D_in, C = 2, 8, 32, 10

    key = jax.random.PRNGKey(0)
    kx, ke, kbe, kc, kbc = jax.random.split(key, 5)

    x = jax.random.normal(kx, (B, S, D_in), dtype=jnp.float32)

    # Deterministic synthetic parameters (stand-in for the pre-trained encoder
    # and the freshly-initialized classifier head).
    w_enc = jax.random.normal(ke, (D_in, HIDDEN), dtype=jnp.float32) * 0.05
    b_enc = jax.random.normal(kbe, (1, HIDDEN), dtype=jnp.float32) * 0.05
    w_cls = jax.random.normal(kc, (HIDDEN, C), dtype=jnp.float32) * 0.05
    b_cls = jax.random.normal(kbc, (1, C), dtype=jnp.float32) * 0.05

    logits = finetune_forward(x, w_enc, b_enc, w_cls, b_cls)
    jax.block_until_ready(logits)

    ref = _reference(x, w_enc, b_enc, w_cls, b_cls)
    assert logits.shape == (B, C)
    # bf16 x / bf16 MXU operands with f32 accumulation -> relaxed tolerance.
    assert jnp.allclose(logits, ref, atol=2e-2, rtol=2e-2), (
        float(jnp.max(jnp.abs(logits - ref))))

    print("KERNEL_OK")
</pallas_src>

<mosaic_0001>
module attributes {stable_mosaic.version = 11 : i64} {
  func.func @_fused_matmul_kernel(%arg0: i32, %arg1: memref<8x256xbf16, #tpu.memory_space<vmem>>, %arg2: memref<256x128xbf16, #tpu.memory_space<vmem>>, %arg3: memref<1x128xf32, #tpu.memory_space<vmem>>, %arg4: memref<8x128xf32, #tpu.memory_space<vmem>>) attributes {dimension_semantics = [#tpu.dimension_semantics<parallel>], iteration_bounds = array<i64: 1>, scalar_prefetch = 0 : i64, scratch_operands = 0 : i64, tpu.core_type = #tpu.core_type<tc>, window_params = [{transform_indices = @transform_0, window_bounds = array<i64: 8, 256>}, {pipeline_mode = #tpu.pipeline_mode<synchronous>, transform_indices = @transform_1, window_bounds = array<i64: 256, 128>}, {pipeline_mode = #tpu.pipeline_mode<synchronous>, transform_indices = @transform_2, window_bounds = array<i64: 1, 128>}, {transform_indices = @transform_3, window_bounds = array<i64: 8, 128>}]} {
    %c0 = arith.constant 0 : index
    %c0_0 = arith.constant 0 : index
    %0 = vector.load %arg1[%c0, %c0_0] : memref<8x256xbf16, #tpu.memory_space<vmem>>, vector<8x256xbf16>
    %c0_1 = arith.constant 0 : index
    %c0_2 = arith.constant 0 : index
    %1 = vector.load %arg2[%c0_1, %c0_2] : memref<256x128xbf16, #tpu.memory_space<vmem>>, vector<256x128xbf16>
    %cst = arith.constant dense<0.000000e+00> : vector<8x128xf32>
    %2 = tpu.matmul %0, %1, %cst {dimension_numbers = #tpu.dot_dimension_numbers<[1], [0], [0], [1], [0, 0, 1, 1], [], []>} : vector<8x256xbf16>, vector<256x128xbf16>, vector<8x128xf32> -> vector<8x128xf32>
    %c0_3 = arith.constant 0 : index
    %c0_4 = arith.constant 0 : index
    %3 = vector.load %arg3[%c0_3, %c0_4] : memref<1x128xf32, #tpu.memory_space<vmem>>, vector<1x128xf32>
    %4 = vector.broadcast %3 : vector<1x128xf32> to vector<8x128xf32>
    %5 = arith.addf %2, %4 : vector<8x128xf32>
    %c0_5 = arith.constant 0 : index
    %c0_6 = arith.constant 0 : index
    %6 = vector.load %arg4[%c0_5, %c0_6] : memref<8x128xf32, #tpu.memory_space<vmem>>, vector<8x128xf32>
    tpu.vector_store %arg4[%c0_5, %c0_6], %5 {strides = array<i32>} : memref<8x128xf32, #tpu.memory_space<vmem>>, vector<8x128xf32>,
    return
  }
  func.func @transform_0(%arg0: i32) -> (i32, i32) {
    %c0_i32 = arith.constant 0 : i32
    %c0_i32_0 = arith.constant 0 : i32
    return %arg0, %c0_i32 : i32, i32
  }
  func.func @transform_1(%arg0: i32) -> (i32, i32) {
    %c0_i32 = arith.constant 0 : i32
    %c0_i32_0 = arith.constant 0 : i32
    %c0_i32_1 = arith.constant 0 : i32
    return %c0_i32, %c0_i32_0 : i32, i32
  }
  func.func @transform_2(%arg0: i32) -> (i32, i32) {
    %c0_i32 = arith.constant 0 : i32
    %c0_i32_0 = arith.constant 0 : i32
    %c0_i32_1 = arith.constant 0 : i32
    return %c0_i32, %c0_i32_0 : i32, i32
  }
  func.func @transform_3(%arg0: i32) -> (i32, i32) {
    %c0_i32 = arith.constant 0 : i32
    %c0_i32_0 = arith.constant 0 : i32
    return %arg0, %c0_i32 : i32, i32
  }
}

</mosaic_0001>

<bundles_post_ra>
// kernel: tpu_custom_call.1
= control target key start
LH: loop header
LB: loop body
LE: loop exit
PB: predicated region body
PF: predicated region fallthrough
CT: control target
= control target key end

     0   :  { %8 = vsyncpa [#allocation3], 0  ;;  %s431_s0 = inlined_call_operand.hbm [shape: bf16[8,256], index: 0, kind: input, shape index: {}]   ;;  %s432_s1 = inlined_call_operand.hbm [shape: bf16[256,128], index: 1, kind: input, shape index: {}]   ;;  %s433_s2 = inlined_call_operand.vmem [shape: f32[1,128], index: 2, kind: input, shape index: {}]   ;;  %s434_s3 = inlined_call_operand.hbm [shape: f32[8,128], index: 3, kind: output, shape index: {}]  }
   0x1   :  { %9 = vsyncpa [#allocation6], 0 }
   0x2   :  { %10 = vsyncpa [#allocation4], 0  ;;  %s16_s14 = sshll.u32 %s431_s0, 4  ;;  %s394_s15 = smov [#allocation2]   ;;  %s17_s14 = int_to_ptr.hbm [resolvable:$true] %s16_s14 }
   0x3   :  { %s18_s16 = sshll.u32 %s394_s15, 4  ;;  %s26_s19 = sshll.u32 %s432_s1, 4  ;;  %s19_s16 = int_to_ptr.vmem [resolvable:$true] %s18_s16  ;;  %s27_s19 = int_to_ptr.hbm [resolvable:$true] %s26_s19 }
   0x4   :  { %21 = dma.hbm_to_vmem [thread:$0]  %s17_s14, 128, %s19_s16, [#allocation3]  }
   0x5   :  { %s395_s20 = smov [#allocation5]   ;;  %s396_s22 = smov 64  }
   0x6   :  { %s28_s21 = sshll.u32 %s395_s20, 4  ;;  %s397_s23 = smov 4   ;;  %s29_s21 = int_to_ptr.vmem [resolvable:$true] %s28_s21 }
   0x7   :  { %34 = dma.hbm_to_vmem [thread:$0]  %s27_s19, 2048, %s29_s21, [#allocation6], %s396_s22, %s396_s22, %s397_s23  }
   0x8   :  { %388 = dma.done.wait [#allocation3], 128  }
   0x9   :  { %389 = vsyncadd [#allocation3], 4294967168 }
   0xa   :  { %390 = dma.done.wait [#allocation6], 2048  }
   0xb   :  { %391 = vsyncadd [#allocation6], 4294965248  ;;  %v301_v0 = vld [vmem:[#allocation5 + $0x38] sm:$0xff]  ;;  %v300_v2 = vld [vmem:[#allocation5 + $0x30] sm:$0xff]  ;;  %s398_s24 = smov [#allocation7]   ;;  %s219_s28 = sshll.u32 %s434_s3, 4  ;;  %s220_s28 = int_to_ptr.hbm [resolvable:$true] %s219_s28 }
   0xc   :  { %v309_v1 = vld [vmem:[#allocation5 + $0x78] sm:$0xff]  ;;  %185 = vmatpush.bf16.msra.mxu0 %v301_v0  ;;  %v308_v3 = vld [vmem:[#allocation5 + $0x70] sm:$0xff]  ;;  %v299_v4 = vld [vmem:[#allocation5 + $0x28] sm:$0xff]  ;;  %s217_s25 = sshll.u32 %s398_s24, 4  ;;  %s218_s25 = int_to_ptr.vmem [resolvable:$true] %s217_s25 }
   0xd   :  { %198 = vmatpush.bf16.msra.mxu1 %v309_v1  ;;  %v307_v5 = vld [vmem:[#allocation5 + $0x68] sm:$0xff]  ;;  %v298_v6 = vld [vmem:[#allocation5 + $0x20] sm:$0xff]  ;;  %v297_v8 = vld [vmem:[#allocation5 + $0x18] sm:$0xff] }
   0xe   :  { %v306_v7 = vld [vmem:[#allocation5 + $0x60] sm:$0xff]  ;;  %v305_v9 = vld [vmem:[#allocation5 + $0x58] sm:$0xff]  ;;  %v296_v10 = vld [vmem:[#allocation5 + $0x10] sm:$0xff] }
   0xf   :  { %v304_v11 = vld [vmem:[#allocation5 + $0x50] sm:$0xff]  ;;  %v295_v12 = vld [vmem:[#allocation5 + $0x8] sm:$0xff]  ;;  %v45_v14 = vld [vmem:[#allocation2] sm:$0xff] }
  0x10   :  { %186 = vmatpush.bf16.msra.mxu0 %v300_v2  ;;  %v303_v13 = vld [vmem:[#allocation5 + $0x48] sm:$0xff]  ;;  %v83_v15 = vunpack.c.l.b16 %v45_v14  ;;  %v84_v16 = vunpack.c.h.b16 %v45_v14  ;;  %v294_v17 = vld [vmem:[#allocation5] sm:$0xff]  ;;  %v315_v21 = vld [vmem:[%s433_s2] ss:$0 sm:$0xff] }
  0x11   :  { %199 = vmatpush.bf16.msra.mxu1 %v308_v3  ;;  %v302_v18 = vld [vmem:[#allocation5 + $0x40] sm:$0xff] }
  0x12   :  { %v85_v19 = vpack.c.b16 %v83_v15, %v83_v15  ;;  %v86_v20 = vpack.c.b16 %v84_v16, %v84_v16 }
  0x14   :  { %187 = vmatpush.bf16.msra.mxu0 %v299_v4 }
  0x15   :  { %200 = vmatpush.bf16.msra.mxu1 %v307_v5 }
  0x18   :  { %188 = vmatpush.bf16.msra.mxu0 %v298_v6 }
  0x19   :  { %201 = vmatpush.bf16.msra.mxu1 %v306_v7 }
  0x1c   :  { %189 = vmatpush.bf16.msra.mxu0 %v297_v8 }
  0x1d   :  { %202 = vmatpush.bf16.msra.mxu1 %v305_v9 }
  0x20   :  { %190 = vmatpush.bf16.msra.mxu0 %v296_v10 }
  0x21   :  { %203 = vmatpush.bf16.msra.mxu1 %v304_v11 }
  0x24   :  { %191 = vmatpush.bf16.msra.mxu0 %v295_v12 }
  0x25   :  { %204 = vmatpush.bf16.msra.mxu1 %v303_v13 }
  0x28   :  { %192 = vmatpush.bf16.msra.mxu0 %v294_v17 }
  0x29   :  { %205 = vmatpush.bf16.msra.mxu1 %v302_v18 }
  0x2b   :  { %193 = vmatmul.bf16.vlgmr.msra.gmra.mxu0 %v85_v19 }
  0x2c   :  { %206 = vmatmul.bf16.vlgmr.msra.gmra.mxu1 %v86_v20 }
  0xa8   :  { %v194_v22 = vpop.f32.mrf.mxu0 }
  0xa9   :  { %v207_v23 = vpop.f32.mrf.mxu1  ;;  %v195_v24 = vadd.f32 %v315_v21, %v194_v22 }
  0xab   :  { %v208_v25 = vadd.f32 %v207_v23, %v195_v24 }
  0xad   :  { %211 = vst [vmem:[#allocation7] sm:$0xff] %v208_v25 }
  0xae   :  { %222 = dma.vmem_to_hbm [thread:$0]  %s218_s25, 128, %s220_s28, [#allocation4]  }
  0xb0   :  { %v196_v26 = vpop.f32.mrf.mxu0 }
  0xb1   :  { %v209_v27 = vpop.f32.mrf.mxu1 }
  0xb2   :  { %392 = dma.done.wait [#allocation4], 128  }
  0xb3   :  { %393 = vsyncadd [#allocation4], 4294967168 }
  0xb4   :  { %227 = vsyncpa [#allocation3], 1 }
  0xb5   :  { %228 = vsyncpa [#allocation6], 1 }
  0xb6   :  { %229 = vsyncpa [#allocation4], 1 }

</bundles_post_ra>
